<compile_context>
chip_gen: v7x
topology: tpu7x:2x2x1
jax: 0.10.0
libtpu: 0.0.40
codegen_flags: <defaults>
</compile_context>

<pallas_src>
import jax
import jax.numpy as jnp
from jax.experimental import pallas as pl
from jax.experimental.pallas import tpu as pltpu


# ---------------- Pallas kernels ----------------

def _fused_encoder_kernel(mask_ref, feat_ref, self_ref, ws_ref, wn_ref,
                          out_ref, acc_ref, deg_ref):
    """grid = (B_tiles, N_tiles); N is the reduction (last, 'arbitrary') axis."""
    k = pl.program_id(1)

    @pl.when(k == 0)
    def _init():
        acc_ref[...] = jnp.zeros_like(acc_ref)
        deg_ref[...] = jnp.zeros_like(deg_ref)

    # (TB, TN) @ (TN, F) on the MXU; mask is int8 in HBM, cast to bf16 here.
    m_bf16 = mask_ref[...].astype(jnp.bfloat16)
    acc_ref[...] += jnp.dot(m_bf16, feat_ref[...],
                            preferred_element_type=jnp.float32)
    # Degree: cross-lane row-sum (XLU) of the same mask tile, f32 accumulate.
    deg_ref[...] += jnp.sum(mask_ref[...].astype(jnp.float32),
                            axis=1, keepdims=True)

    @pl.when(k == pl.num_programs(1) - 1)
    def _finalize():
        # max(deg, 1): PyTorch would produce nan for isolated nodes; clamp
        # instead (deliberate, documented semantic difference).
        inv_deg = pl.reciprocal(jnp.maximum(deg_ref[...], 1.0), approx=True)
        neigh = (acc_ref[...] * inv_deg).astype(jnp.bfloat16)        # (TB, F)
        out = jnp.dot(self_ref[...], ws_ref[...],
                      preferred_element_type=jnp.float32)
        out += jnp.dot(neigh, wn_ref[...],
                       preferred_element_type=jnp.float32)
        out_ref[...] = jnp.maximum(out, 0.0).astype(out_ref.dtype)


def _fused_gcn_kernel(mask_ref, feat_ref, wn_ref, out_ref, acc_ref, deg_ref):
    """gcn=True path: combined = mean over (neighbors + self), weight (F, Ep)."""
    k = pl.program_id(1)

    @pl.when(k == 0)
    def _init():
        acc_ref[...] = jnp.zeros_like(acc_ref)
        deg_ref[...] = jnp.zeros_like(deg_ref)

    m_bf16 = mask_ref[...].astype(jnp.bfloat16)
    acc_ref[...] += jnp.dot(m_bf16, feat_ref[...],
                            preferred_element_type=jnp.float32)
    deg_ref[...] += jnp.sum(mask_ref[...].astype(jnp.float32),
                            axis=1, keepdims=True)

    @pl.when(k == pl.num_programs(1) - 1)
    def _finalize():
        inv_deg = pl.reciprocal(jnp.maximum(deg_ref[...], 1.0), approx=True)
        neigh = (acc_ref[...] * inv_deg).astype(jnp.bfloat16)
        out = jnp.dot(neigh, wn_ref[...], preferred_element_type=jnp.float32)
        out_ref[...] = jnp.maximum(out, 0.0).astype(out_ref.dtype)


# ---------------- pallas_call wrapper ----------------

def _round_up(x, m):
    return (x + m - 1) // m * m


def _fused_call(mask, feat, self_feats, w_self, w_neigh, tb, tn):
    """mask (Bp,Np) int8, feat (Np,F) bf16, self_feats (Bp,F) bf16 or None,
    w_self/w_neigh (F, Ep) bf16 with Ep a multiple of 128 (lane-dense out)."""
    Bp, Np = mask.shape
    F = feat.shape[1]
    Ep = w_neigh.shape[1]
    grid = (Bp // tb, Np // tn)
    gcn = self_feats is None

    mask_spec = pl.BlockSpec((tb, tn), lambda i, k: (i, k))
    feat_spec = pl.BlockSpec((tn, F), lambda i, k: (k, 0))
    w_spec = pl.BlockSpec((F, Ep), lambda i, k: (0, 0))
    # NOTE: on v7x, pipeline_mode=pl.Buffered(1) on the (constant-index) weight
    # specs would save one VMEM copy each; bf16 weights already halve that
    # footprint, so the default double-buffering is kept for robustness.

    if gcn:
        kernel = _fused_gcn_kernel
        in_specs = [mask_spec, feat_spec, w_spec]
        operands = (mask, feat, w_neigh)
        n_w = 1
    else:
        kernel = _fused_encoder_kernel
        self_spec = pl.BlockSpec((tb, F), lambda i, k: (i, 0))
        in_specs = [mask_spec, feat_spec, self_spec, w_spec, w_spec]
        operands = (mask, feat, self_feats, w_self, w_neigh)
        n_w = 2

    flops = 2 * Bp * Np * F + n_w * 2 * Bp * F * Ep
    bytes_accessed = int(sum(int(x.size) * x.dtype.itemsize for x in operands)
                         + Bp * Ep * 4)

    return pl.pallas_call(
        kernel,
        out_shape=jax.ShapeDtypeStruct((Bp, Ep), jnp.float32),
        grid_spec=pltpu.PrefetchScalarGridSpec(
            num_scalar_prefetch=0,
            grid=grid,
            in_specs=in_specs,
            out_specs=pl.BlockSpec((tb, Ep), lambda i, k: (i, 0)),
            scratch_shapes=[pltpu.VMEM((tb, F), jnp.float32),   # neigh-sum acc
                            pltpu.VMEM((tb, 1), jnp.float32)],  # degree acc
        ),
        compiler_params=pltpu.CompilerParams(
            dimension_semantics=("parallel", "arbitrary"),
            vmem_limit_bytes=64 * 1024 * 1024),
        cost_estimate=pl.CostEstimate(
            flops=int(flops), transcendentals=0, bytes_accessed=bytes_accessed),
    )(*operands)


# ---------------- Forward (glue in plain JAX) ----------------

def encoder_forward(nodes, features, adj_mask, weight, num_sample=10, gcn=False,
                    tb=256, tn=512):
    """Pallas GraphSage Encoder forward.

    nodes    : (B,)   int32 indices into features / adj_mask rows
    features : (N, F) float32 node-feature table
    adj_mask : (N, N) adjacency mask (1.0 = edge)
    weight   : (F, E) if gcn else (2F, E), float32
    tb, tn   : batch / reduction tile sizes (tn a multiple of 128).
               v5e/v6e (128 MiB VMEM) can raise tn (or keep the whole feature
               table resident); keep tn <= 512 on v7x (64 MiB VMEM).
    """
    B = int(nodes.shape[0])
    N, F = features.shape
    E = weight.shape[1]

    # ---- neighbor "sampling": deterministic truncation to num_sample ----
    batch_mask = adj_mask[nodes].astype(jnp.float32)            # (B, N)
    csum = jnp.cumsum(batch_mask, axis=1)
    sampled = jnp.where(csum <= float(num_sample), batch_mask, 0.0)
    if gcn:
        # GraphSage MeanAggregator with gcn=True adds the node itself to the
        # sampled neighbor set before taking the mean.
        sampled = jnp.maximum(sampled, jax.nn.one_hot(nodes, N,
                                                      dtype=jnp.float32))

    # ---- tile sizes & zero-padding (exact no-ops for sum/degree/weights) ----
    TN = min(tn, _round_up(N, 128))
    TN = max(128, (TN // 128) * 128)
    TB = min(tb, _round_up(B, 32))          # int8 mask -> keep multiples of 32
    TB = max(32, _round_up(TB, 32))
    # v7x megacore: prefer >= 2 B tiles whenever the batch allows it.
    while TB > 32 and _round_up(B, TB) // TB < 2:
        TB = _round_up(TB // 2, 32)
    Bp = _round_up(B, TB)
    Np = _round_up(N, TN)
    Ep = _round_up(E, 128)                  # lane-dense output store

    # int8 mask (values exactly 0/1): 4x less HBM traffic on the (B, N) stream.
    mask_p = jnp.zeros((Bp, Np), jnp.int8).at[:B, :N].set(
        sampled.astype(jnp.int8))
    feat_p = jnp.zeros((Np, F), jnp.bfloat16).at[:N].set(
        features.astype(jnp.bfloat16))

    if gcn:
        assert weight.shape[0] == F, "gcn=True expects a (feat_dim, embed_dim) weight"
        wn_p = jnp.zeros((F, Ep), jnp.bfloat16).at[:, :E].set(
            weight.astype(jnp.bfloat16))
        out = _fused_call(mask_p, feat_p, None, None, wn_p, TB, TN)
    else:
        assert weight.shape[0] == 2 * F, "gcn=False expects a (2*feat_dim, embed_dim) weight"
        self_p = jnp.zeros((Bp, F), jnp.bfloat16).at[:B].set(
            features[nodes].astype(jnp.bfloat16))
        ws_p = jnp.zeros((F, Ep), jnp.bfloat16).at[:, :E].set(
            weight[:F].astype(jnp.bfloat16))
        wn_p = jnp.zeros((F, Ep), jnp.bfloat16).at[:, :E].set(
            weight[F:].astype(jnp.bfloat16))
        out = _fused_call(mask_p, feat_p, self_p, ws_p, wn_p, TB, TN)

    return out[:B, :E]


# ---------------- Demo / self-check ----------------

if __name__ == "__main__":
    key = jax.random.PRNGKey(0)
    N_total, F, E, B, num_sample = 256, 16, 32, 16, 10
    k1, k2, k3, k4 = jax.random.split(key, 4)

    # Node feature table (the `features` embedding in the PyTorch module).
    features = jax.random.normal(k1, (N_total, F), dtype=jnp.float32)

    # Random adjacency (no self loops) standing in for adj_lists.
    adj = (jax.random.uniform(k2, (N_total, N_total)) < 0.1).astype(jnp.float32)
    adj = adj * (1.0 - jnp.eye(N_total, dtype=jnp.float32))

    # Xavier-uniform weights, deterministic.
    bound = (6.0 / (2 * F + E)) ** 0.5
    weight = jax.random.uniform(k3, (2 * F, E), jnp.float32, -bound, bound)
    bound_g = (6.0 / (F + E)) ** 0.5
    weight_gcn = jax.random.uniform(k4, (F, E), jnp.float32, -bound_g, bound_g)

    nodes = jnp.arange(B, dtype=jnp.int32)

    # Small tiles so the demo exercises the tiled (parallel B, arbitrary N)
    # grid with multi-step accumulation (N_total / tn = 2 reduction steps).
    out = encoder_forward(nodes, features, adj, weight,
                          num_sample=num_sample, gcn=False, tb=32, tn=128)
    out = jax.block_until_ready(out)
    out_gcn = encoder_forward(nodes, features, adj, weight_gcn,
                              num_sample=num_sample, gcn=True, tb=32, tn=128)
    out_gcn = jax.block_until_ready(out_gcn)

    # Pure-JAX f32 reference (kernel uses bf16 operands -> loose tolerance).
    bm = adj[nodes]
    sm = jnp.where(jnp.cumsum(bm, axis=1) <= float(num_sample), bm, 0.0)
    neigh_ref = (sm @ features) / jnp.maximum(sm.sum(axis=1, keepdims=True), 1.0)
    combined_ref = jnp.concatenate([features[nodes], neigh_ref], axis=1)
    ref = jnp.maximum(combined_ref @ weight, 0.0)

    sm_g = jnp.maximum(sm, jax.nn.one_hot(nodes, N_total, dtype=jnp.float32))
    neigh_g = (sm_g @ features) / jnp.maximum(sm_g.sum(axis=1, keepdims=True), 1.0)
    ref_gcn = jnp.maximum(neigh_g @ weight_gcn, 0.0)

    assert out.shape == (B, E)
    assert out_gcn.shape == (B, E)
    assert jnp.allclose(out, ref, atol=5e-2, rtol=5e-2), \
        float(jnp.abs(out - ref).max())
    assert jnp.allclose(out_gcn, ref_gcn, atol=5e-2, rtol=5e-2), \
        float(jnp.abs(out_gcn - ref_gcn).max())

    print("KERNEL_OK")
</pallas_src>

<mosaic_0001>
module attributes {stable_mosaic.version = 11 : i64} {
  func.func @_fused_encoder_kernel(%arg0: i32, %arg1: i32, %arg2: memref<32x128xi8, #tpu.memory_space<vmem>>, %arg3: memref<128x16xbf16, #tpu.memory_space<vmem>>, %arg4: memref<32x16xbf16, #tpu.memory_space<vmem>>, %arg5: memref<16x128xbf16, #tpu.memory_space<vmem>>, %arg6: memref<16x128xbf16, #tpu.memory_space<vmem>>, %arg7: memref<32x128xf32, #tpu.memory_space<vmem>>, %arg8: memref<32x16xf32, #tpu.memory_space<vmem>>, %arg9: memref<32x1xf32, #tpu.memory_space<vmem>>) attributes {dimension_semantics = [#tpu.dimension_semantics<parallel>, #tpu.dimension_semantics<arbitrary>], iteration_bounds = array<i64: 1, 2>, scalar_prefetch = 0 : i64, scratch_operands = 2 : i64, tpu.core_type = #tpu.core_type<tc>, window_params = [{transform_indices = @transform_0, window_bounds = array<i64: 32, 128>}, {transform_indices = @transform_1, window_bounds = array<i64: 128, 16>}, {transform_indices = @transform_2, window_bounds = array<i64: 32, 16>}, {pipeline_mode = #tpu.pipeline_mode<synchronous>, transform_indices = @transform_3, window_bounds = array<i64: 16, 128>}, {pipeline_mode = #tpu.pipeline_mode<synchronous>, transform_indices = @transform_4, window_bounds = array<i64: 16, 128>}, {transform_indices = @transform_5, window_bounds = array<i64: 32, 128>}]} {
    %c0_i32 = arith.constant 0 : i32
    %0 = arith.cmpi eq, %arg1, %c0_i32 : i32
    %1 = arith.extui %0 : i1 to i32
    %c0_i32_0 = arith.constant 0 : i32
    %2 = arith.cmpi ne, %1, %c0_i32_0 : i32
    scf.if %2 {
      %cst_16 = arith.constant 0.000000e+00 : f32
      %20 = vector.broadcast %cst_16 : f32 to vector<32x16xf32>
      %c0_17 = arith.constant 0 : index
      %c0_18 = arith.constant 0 : index
      %21 = vector.load %arg8[%c0_17, %c0_18] : memref<32x16xf32, #tpu.memory_space<vmem>>, vector<32x16xf32>
      tpu.vector_store %arg8[%c0_17, %c0_18], %20 {strides = array<i32>} : memref<32x16xf32, #tpu.memory_space<vmem>>, vector<32x16xf32>,
      %cst_19 = arith.constant 0.000000e+00 : f32
      %22 = vector.broadcast %cst_19 : f32 to vector<32x1xf32>
      %c0_20 = arith.constant 0 : index
      %c0_21 = arith.constant 0 : index
      %23 = vector.load %arg9[%c0_20, %c0_21] : memref<32x1xf32, #tpu.memory_space<vmem>>, vector<32x1xf32>
      tpu.vector_store %arg9[%c0_20, %c0_21], %22 {strides = array<i32>} : memref<32x1xf32, #tpu.memory_space<vmem>>, vector<32x1xf32>,
    } else {
    }
    %c0 = arith.constant 0 : index
    %c0_1 = arith.constant 0 : index
    %3 = vector.load %arg2[%c0, %c0_1] : memref<32x128xi8, #tpu.memory_space<vmem>>, vector<32x128xi8>
    %4 = arith.sitofp %3 : vector<32x128xi8> to vector<32x128xbf16>
    %c0_2 = arith.constant 0 : index
    %c0_3 = arith.constant 0 : index
    %5 = vector.load %arg8[%c0_2, %c0_3] : memref<32x16xf32, #tpu.memory_space<vmem>>, vector<32x16xf32>
    %c0_4 = arith.constant 0 : index
    %c0_5 = arith.constant 0 : index
    %6 = vector.load %arg3[%c0_4, %c0_5] : memref<128x16xbf16, #tpu.memory_space<vmem>>, vector<128x16xbf16>
    %cst = arith.constant dense<0.000000e+00> : vector<32x16xf32>
    %7 = tpu.matmul %4, %6, %cst {dimension_numbers = #tpu.dot_dimension_numbers<[1], [0], [0], [1], [0, 0, 1, 1], [], []>} : vector<32x128xbf16>, vector<128x16xbf16>, vector<32x16xf32> -> vector<32x16xf32>
    %8 = arith.addf %5, %7 : vector<32x16xf32>
    %c0_6 = arith.constant 0 : index
    %c0_7 = arith.constant 0 : index
    %9 = vector.load %arg8[%c0_6, %c0_7] : memref<32x16xf32, #tpu.memory_space<vmem>>, vector<32x16xf32>
    tpu.vector_store %arg8[%c0_6, %c0_7], %8 {strides = array<i32>} : memref<32x16xf32, #tpu.memory_space<vmem>>, vector<32x16xf32>,
    %c0_8 = arith.constant 0 : index
    %c0_9 = arith.constant 0 : index
    %10 = vector.load %arg9[%c0_8, %c0_9] : memref<32x1xf32, #tpu.memory_space<vmem>>, vector<32x1xf32>
    %c0_10 = arith.constant 0 : index
    %c0_11 = arith.constant 0 : index
    %11 = vector.load %arg2[%c0_10, %c0_11] : memref<32x128xi8, #tpu.memory_space<vmem>>, vector<32x128xi8>
    %12 = arith.sitofp %11 : vector<32x128xi8> to vector<32x128xf32>
    %cst_12 = arith.constant dense<0.000000e+00> : vector<32xf32>
    %13 = vector.multi_reduction <add>, %12, %cst_12 [1] : vector<32x128xf32> to vector<32xf32>
    %14 = vector.shape_cast %13 : vector<32xf32> to vector<32x1xf32>
    %15 = arith.addf %10, %14 : vector<32x1xf32>
    %c0_13 = arith.constant 0 : index
    %c0_14 = arith.constant 0 : index
    %16 = vector.load %arg9[%c0_13, %c0_14] : memref<32x1xf32, #tpu.memory_space<vmem>>, vector<32x1xf32>
    tpu.vector_store %arg9[%c0_13, %c0_14], %15 {strides = array<i32>} : memref<32x1xf32, #tpu.memory_space<vmem>>, vector<32x1xf32>,
    %c1_i32 = arith.constant 1 : i32
    %17 = arith.cmpi eq, %arg1, %c1_i32 : i32
    %18 = arith.extui %17 : i1 to i32
    %c0_i32_15 = arith.constant 0 : i32
    %19 = arith.cmpi ne, %18, %c0_i32_15 : i32
    scf.if %19 {
      %c0_16 = arith.constant 0 : index
      %c0_17 = arith.constant 0 : index
      %20 = vector.load %arg9[%c0_16, %c0_17] : memref<32x1xf32, #tpu.memory_space<vmem>>, vector<32x1xf32>
      %cst_18 = arith.constant 1.000000e+00 : f32
      %21 = vector.broadcast %cst_18 : f32 to vector<32x1xf32>
      %22 = arith.maximumf %20, %21 : vector<32x1xf32>
      %23 = tpu.reciprocal %22 {approx = true} : vector<32x1xf32> -> vector<32x1xf32>
      %c0_19 = arith.constant 0 : index
      %c0_20 = arith.constant 0 : index
      %24 = vector.load %arg8[%c0_19, %c0_20] : memref<32x16xf32, #tpu.memory_space<vmem>>, vector<32x16xf32>
      %25 = vector.broadcast %23 : vector<32x1xf32> to vector<32x16xf32>
      %26 = arith.mulf %24, %25 : vector<32x16xf32>
      %27 = arith.truncf %26 : vector<32x16xf32> to vector<32x16xbf16>
      %c0_21 = arith.constant 0 : index
      %c0_22 = arith.constant 0 : index
      %28 = vector.load %arg4[%c0_21, %c0_22] : memref<32x16xbf16, #tpu.memory_space<vmem>>, vector<32x16xbf16>
      %c0_23 = arith.constant 0 : index
      %c0_24 = arith.constant 0 : index
      %29 = vector.load %arg5[%c0_23, %c0_24] : memref<16x128xbf16, #tpu.memory_space<vmem>>, vector<16x128xbf16>
      %cst_25 = arith.constant dense<0.000000e+00> : vector<32x128xf32>
      %30 = tpu.matmul %28, %29, %cst_25 {dimension_numbers = #tpu.dot_dimension_numbers<[1], [0], [0], [1], [0, 0, 1, 1], [], []>} : vector<32x16xbf16>, vector<16x128xbf16>, vector<32x128xf32> -> vector<32x128xf32>
      %c0_26 = arith.constant 0 : index
      %c0_27 = arith.constant 0 : index
      %31 = vector.load %arg6[%c0_26, %c0_27] : memref<16x128xbf16, #tpu.memory_space<vmem>>, vector<16x128xbf16>
      %cst_28 = arith.constant dense<0.000000e+00> : vector<32x128xf32>
      %32 = tpu.matmul %27, %31, %cst_28 {dimension_numbers = #tpu.dot_dimension_numbers<[1], [0], [0], [1], [0, 0, 1, 1], [], []>} : vector<32x16xbf16>, vector<16x128xbf16>, vector<32x128xf32> -> vector<32x128xf32>
      %33 = arith.addf %30, %32 : vector<32x128xf32>
      %cst_29 = arith.constant 0.000000e+00 : f32
      %34 = vector.broadcast %cst_29 : f32 to vector<32x128xf32>
      %35 = arith.maximumf %33, %34 : vector<32x128xf32>
      %c0_30 = arith.constant 0 : index
      %c0_31 = arith.constant 0 : index
      %36 = vector.load %arg7[%c0_30, %c0_31] : memref<32x128xf32, #tpu.memory_space<vmem>>, vector<32x128xf32>
      tpu.vector_store %arg7[%c0_30, %c0_31], %35 {strides = array<i32>} : memref<32x128xf32, #tpu.memory_space<vmem>>, vector<32x128xf32>,
    } else {
    }
    return
  }
  func.func @transform_0(%arg0: i32, %arg1: i32) -> (i32, i32) {
    %c0_i32 = arith.constant 0 : i32
    return %arg0, %arg1 : i32, i32
  }
  func.func @transform_1(%arg0: i32, %arg1: i32) -> (i32, i32) {
    %c0_i32 = arith.constant 0 : i32
    %c0_i32_0 = arith.constant 0 : i32
    return %arg1, %c0_i32 : i32, i32
  }
  func.func @transform_2(%arg0: i32, %arg1: i32) -> (i32, i32) {
    %c0_i32 = arith.constant 0 : i32
    %c0_i32_0 = arith.constant 0 : i32
    return %arg0, %c0_i32 : i32, i32
  }
  func.func @transform_3(%arg0: i32, %arg1: i32) -> (i32, i32) {
    %c0_i32 = arith.constant 0 : i32
    %c0_i32_0 = arith.constant 0 : i32
    %c0_i32_1 = arith.constant 0 : i32
    return %c0_i32, %c0_i32_0 : i32, i32
  }
  func.func @transform_4(%arg0: i32, %arg1: i32) -> (i32, i32) {
    %c0_i32 = arith.constant 0 : i32
    %c0_i32_0 = arith.constant 0 : i32
    %c0_i32_1 = arith.constant 0 : i32
    return %c0_i32, %c0_i32_0 : i32, i32
  }
  func.func @transform_5(%arg0: i32, %arg1: i32) -> (i32, i32) {
    %c0_i32 = arith.constant 0 : i32
    %c0_i32_0 = arith.constant 0 : i32
    return %arg0, %c0_i32 : i32, i32
  }
}

</mosaic_0001>

<bundles_post_ra>
// kernel: tpu_custom_call.1
= control target key start
LH: loop header
LB: loop body
LE: loop exit
PB: predicated region body
PF: predicated region fallthrough
CT: control target
= control target key end

     0   :  { %10 = vsyncpa [#allocation5], 0  ;;  %s1663_s0 = inlined_call_operand.hbm [shape: s8[32,256], index: 0, kind: input, shape index: {}]   ;;  %s1664_s1 = inlined_call_operand.hbm [shape: bf16[256,16], index: 1, kind: input, shape index: {}]   ;;  %s1665_s2 = inlined_call_operand.hbm [shape: bf16[32,16], index: 2, kind: input, shape index: {}]   ;;  %s1666_s3 = inlined_call_operand.hbm [shape: bf16[16,128], index: 3, kind: input, shape index: {}]   ;;  %s1667_s4 = inlined_call_operand.hbm [shape: bf16[16,128], index: 4, kind: input, shape index: {}]   ;;  %s1668_s5 = inlined_call_operand.hbm [shape: f32[32,128], index: 5, kind: output, shape index: {}]  }
   0x1   :  { %12 = vsyncpa [#allocation5 + $0x1], 0 }
   0x2   :  { %13 = vsyncpa [#allocation8], 0 }
   0x3   :  { %15 = vsyncpa [#allocation8 + $0x1], 0 }
   0x4   :  { %16 = vsyncpa [#allocation11], 0 }
   0x5   :  { %17 = vsyncpa [#allocation6], 0  ;;  %s1337_s18 = smov 0   ;;  %s1339_s19 = smov 0  }
   0x6   :  { %s1341_s20 = smov 0   ;;  %s1343_s21 = smov 0  }
   0x7   :  { %s1345_s22 = smov 0   ;;  %s1347_s23 = smov 0  }
   0x8 LB: > { %s1366_s24 = sadd.s32 4294967295, %s1293_s23   ;;  %p57_p0 = scmp.ne.s32.totalorder %s1277_s19, %s1273_s18  ;;  %s1293_s23 = sphi %s1347_s23, %s23_s23   ;;  %s1289_s22 = sphi %s1345_s22, %s1691_s22   ;;  %s1285_s21 = sphi %s1343_s21, %s1690_s21   ;;  %s1281_s20 = sphi %s1341_s20, %s1689_s20   ;;  %s1277_s19 = sphi %s1339_s19, %s1688_s19   ;;  %s1273_s18 = sphi %s1337_s18, %s1687_s18  }
   0x9   : > { %p1669_p1 = scmp.eq.s32.totalorder %s1366_s24, 0  ;;  %p840_p2 = scmp.ge.s32.totalorder %s1293_s23, 1 }
   0xa   : > { %p188_p3 = scmp.lt.s32.totalorder %s1293_s23, 3  ;;  %s1295_s27 = smov [#allocation9]  }
   0xb   : > { %p1374_p4 = por %p1669_p1, %p57_p0  ;;  %s203_s28 = sshll.u32 %s1295_s27, 4  ;;  %s1382_s28 = int_to_ptr.vmem [resolvable:$true] %s203_s28 }
   0xc   : > { %p1378_p5 = pnand %p840_p2, %p188_p3  ;;  %s1296_s30 = smov [#allocation10]  }
   0xd   : > { %s1674_s25 = scalar_select %p1374_p4, 1, 0 }
   0xe   : > { %s1675_s26 = scalar_select %p1378_p5, 1, 0 }
   0xf   : > { %p951_p6 = pneg %p1378_p5  ;;  %s216_s6 = sshll.u32 %s1296_s30, 4  ;;  %s1392_s6 = int_to_ptr.vmem [resolvable:$true] %s216_s6 }
  0x10   : > { %s1297_s7 = smov [#allocation12]   ;;  %s1057_s11 = scalar_lea.hbm %s1665_s2, 256 }
  0x11   : > { %p1388_p7 = pnand %p951_p6, %p1669_p1  ;;  %s1394_s8 = sshll.u32 %s1297_s7, 4  ;;  %s230_s8 = int_to_ptr.vmem [resolvable:$true] %s1394_s8 }
  0x12   : > { %p1058_p8 = scmp.ne.s32.totalorder %s1665_s2, %s1057_s11  ;;  %p1064_p12 = scmp.lt.u32.totalorder %s1057_s11, %s1665_s2 }
  0x13   : > { %p1404_p9 = pneg %p1388_p7 }
  0x15   : > { %p1060_p10 = pnand %p1404_p9, %p1058_p8 }
  0x17   : > { %p1061_p11 = pneg %p1060_p10 }
  0x19   : > { %p1066_p13 = pnand %p1064_p12, %p1061_p11 }
  0x1b   : > { %1069 = shalt.err (!%p1066_p13)
}
  0x1c   : > { %s1070_s17 = scalar_lea.vmem %s1382_s28, 256  ;;  %p1078_p6 = scmp.lt.s32.totalorder %s1382_s28, %s1382_s28 }
  0x1d   : > { %p1071_p0 = scmp.ne.s32.totalorder %s1382_s28, %s1070_s17  ;;  %p1079_p1 = scmp.lt.s32.totalorder %s1070_s17, %s1070_s17 }
  0x1f   : > { %p1073_p2 = pnand %p1071_p0, %p1404_p9  ;;  %p1080_p8 = por %p1079_p1, %p1078_p6 }
  0x21   : > { %p1074_p3 = pneg %p1073_p2 }
  0x23   : > { %p1081_p10 = pnand %p1080_p8, %p1074_p3 }
  0x25   : > { %1084 = shalt.err (!%p1081_p10)
}
  0x26   : > { %s1672_s18 = smov 64   ;;  %s1673_s27 = smov 4  }
  0x27   : > { %954 = dma.hbm_to_vmem [thread:$0]  (!%p1388_p7), %s1665_s2, 256, %s1382_s28, [#allocation8], %s1672_s18, %s1672_s18, %s1673_s27  }
  0x28   : > { %s1085_s11 = scalar_lea.hbm %s1666_s3, 128 }
  0x29   : > { %p1086_p1 = scmp.ne.s32.totalorder %s1666_s3, %s1085_s11  ;;  %p1092_p13 = scmp.lt.u32.totalorder %s1085_s11, %s1666_s3 }
  0x2b   : > { %p1088_p11 = pnand %p1086_p1, %p1404_p9 }
  0x2d   : > { %p1089_p12 = pneg %p1088_p11 }
  0x2f   : > { %p1094_p0 = pnand %p1092_p13, %p1089_p12 }
  0x31   : > { %1097 = shalt.err (!%p1094_p0)
}
  0x32   : > { %s1098_s28 = scalar_lea.vmem %s1392_s6, 128  ;;  %p1106_p8 = scmp.lt.s32.totalorder %s1392_s6, %s1392_s6 }
  0x33   : > { %p1099_p2 = scmp.ne.s32.totalorder %s1392_s6, %s1098_s28  ;;  %p1107_p10 = scmp.lt.s32.totalorder %s1098_s28, %s1098_s28 }
  0x35   : > { %p1101_p3 = pnand %p1099_p2, %p1404_p9  ;;  %p1108_p1 = por %p1107_p10, %p1106_p8 }
  0x37   : > { %p1102_p6 = pneg %p1101_p3 }
  0x39   : > { %p1109_p11 = pnand %p1108_p1, %p1102_p6 }
  0x3b   : > { %1112 = shalt.err (!%p1109_p11)
}
  0x3c   : > { %957 = dma.hbm_to_vmem [thread:$0]  (!%p1388_p7), %s1666_s3, 128, %s1392_s6, [#allocation11], %s1672_s18, %s1672_s18, %s1673_s27  }
  0x3d   : > { %s1113_s10 = scalar_lea.hbm %s1667_s4, 128 }
  0x3e   : > { %p1114_p12 = scmp.ne.s32.totalorder %s1667_s4, %s1113_s10  ;;  %p1120_p2 = scmp.lt.u32.totalorder %s1113_s10, %s1667_s4 }
  0x40   : > { %p1116_p13 = pnand %p1114_p12, %p1404_p9 }
  0x42   : > { %p1117_p0 = pneg %p1116_p13 }
  0x44   : > { %p1122_p3 = pnand %p1120_p2, %p1117_p0 }
  0x46   : > { %1125 = shalt.err (!%p1122_p3)
}
  0x47   : > { %s1126_s16 = scalar_lea.vmem %s230_s8, 128  ;;  %p1134_p1 = scmp.lt.s32.totalorder %s230_s8, %s230_s8 }
  0x48   : > { %p1127_p6 = scmp.ne.s32.totalorder %s230_s8, %s1126_s16  ;;  %p1135_p11 = scmp.lt.s32.totalorder %s1126_s16, %s1126_s16 }
  0x4a   : > { %p1129_p8 = pnand %p1127_p6, %p1404_p9  ;;  %p1136_p4 = por %p1135_p11, %p1134_p1 }
  0x4c   : > { %p1130_p10 = pneg %p1129_p8 }
  0x4e   : > { %p1137_p5 = pnand %p1136_p4, %p1130_p10 }
  0x50   : > { %1140 = shalt.err (!%p1137_p5)
}
  0x51   : > { %960 = dma.hbm_to_vmem [thread:$0]  (!%p1388_p7), %s1667_s4, 128, %s230_s8, [#allocation11], %s1672_s18, %s1672_s18, %s1673_s27  }
  0x52   : > { %s44_s14 = sadd.s32 1, %s1281_s20  ;;  %s32_s17 = sadd.s32 1, %s1289_s22 }
  0x53   : > { %p51_p4 = scmp.ne.s32.totalorder %s1281_s20, %s1277_s19  ;;  %p33_p5 = scmp.ge.s32.totalorder %s32_s17, 2 }
  0x54   : > { %p52_p9 = scmp.eq.s32.totalorder %s1293_s23, 0  ;;  %p971_p12 = scmp.lt.s32.totalorder %s1293_s23, 2 }
  0x55   : > { %s1483_s29 = sand.u32 1, %s1281_s20   ;;  %s1693_s17 = smov (%p33_p5, %s32_s17), 0 }
  0x56   : > { %p53_p13 = por %p52_p9, %p51_p4  ;;  %s40_s30 = ssub.s32 %s1289_s22, %s1693_s17 }
  0x57   : > { %s845_s8 = sshll.u32 %s1483_s29, 3  ;;  %p42_p7 = scmp.eq.s32.totalorder %s40_s30, 0 }
  0x58   : > { %s846_s7 = sshll.u32 %s1289_s22, 7  ;;  %s247_s9 = scalar_lea.vmem [#allocation4], %s845_s8 }
  0x59   : > { %s256_s10 = sshll.u32 %s247_s9, 4  ;;  %s1497_s15 = scalar_lea.hbm %s1663_s0, %s846_s7  ;;  %s1499_s10 = int_to_ptr.vmem [resolvable:$true] %s256_s10 }
  0x5a   : > { %s1492_s11 = scalar_select %p42_p7, %s1281_s20, %s44_s14  }
  0x5b   : > { %p1503_p0 = pnand %p971_p12, %p53_p13  ;;  %s847_s6 = sshll.u32 %s1483_s29, 6 }
  0x5c   : > { %s878_s28 = sshll.u32 %s1289_s22, 10  ;;  %s1509_s14 = scalar_lea.vmem [#allocation7], %s847_s6 }
  0x5d   : > { %s274_s30 = sshll.u32 %s1509_s14, 4  ;;  %s244_s8 = scalar_lea.sflag [#allocation5], %s1483_s29  ;;  %s1540_s30 = int_to_ptr.vmem [resolvable:$true] %s274_s30 }
  0x5e   : > { %s1141_s7 = scalar_lea.hbm %s1497_s15, 128  ;;  %p1143_p3 = pneg %p1503_p0 }
  0x5f   : > { %p1142_p2 = scmp.ne.s32.totalorder %s1497_s15, %s1141_s7  ;;  %s1146_s13 = scalar_lea.hbm %s1663_s0, 256 }
  0x60   : > { %p1147_p10 = scmp.lt.u32.totalorder %s1497_s15, %s1663_s0  ;;  %p1148_p1 = scmp.lt.u32.totalorder %s1146_s13, %s1141_s7 }
  0x61   : > { %p1144_p6 = pnand %p1143_p3, %p1142_p2  ;;  %p1150_p4 = scmp.lt.u32.totalorder %s1141_s7, %s1497_s15 }
  0x62   : > { %p1149_p11 = por %p1148_p1, %p1147_p10 }
  0x63   : > { %p1145_p8 = pneg %p1144_p6 }
  0x64   : > { %p1151_p5 = por %p1150_p4, %p1149_p11 }
  0x66   : > { %p1152_p9 = pnand %p1151_p5, %p1145_p8 }
  0x68   : > { %1155 = shalt.err (!%p1152_p9)
}
  0x69   : > { %s1156_s29 = scalar_lea.vmem %s1499_s10, 128  ;;  %s1300_s6 = smov [#allocation4]  }
  0x6a   : > { %p1157_p12 = scmp.ne.s32.totalorder %s1499_s10, %s1156_s29  ;;  %s1161_s9 = sshll.u32 %s1300_s6, 4  ;;  %s1162_s9 = int_to_ptr.vmem [resolvable:$false] %s1161_s9 }
  0x6b   : > { %s1163_s18 = scalar_lea.vmem %s1162_s9, 256  ;;  %p1164_p2 = scmp.lt.s32.totalorder %s1499_s10, %s1162_s9 }
  0x6c   : > { %p1159_p13 = pnand %p1157_p12, %p1143_p3  ;;  %p1165_p6 = scmp.lt.s32.totalorder %s1163_s18, %s1156_s29 }
  0x6e   : > { %p1160_p7 = pneg %p1159_p13  ;;  %p1166_p10 = por %p1165_p6, %p1164_p2 }
  0x70   : > { %p1167_p1 = pnand %p1166_p10, %p1160_p7 }
  0x72   : > { %1170 = shalt.err (!%p1167_p1)
}
  0x73   : > { %964 = dma.hbm_to_vmem [thread:$0]  (!%p1503_p0), %s1497_s15, 128, %s1499_s10, %s244_s8  }
  0x74   : > { %s263_s27 = sand.u32 1, %s1293_s23   ;;  %s1548_s13 = scalar_lea.hbm %s1664_s1, %s878_s28 }
  0x75   : > { %s1550_s29 = scalar_lea.sflag [#allocation8], %s263_s27  ;;  %s1171_s6 = scalar_lea.hbm %s1548_s13, 1024 }
  0x76   : > { %p1172_p8 = scmp.ne.s32.totalorder %s1548_s13, %s1171_s6  ;;  %s1176_s14 = scalar_lea.hbm %s1664_s1, 2048 }
  0x77   : > { %p1177_p5 = scmp.lt.u32.totalorder %s1548_s13, %s1664_s1  ;;  %p1178_p9 = scmp.lt.u32.totalorder %s1176_s14, %s1171_s6 }
  0x78   : > { %p1174_p11 = pnand %p1172_p8, %p1143_p3  ;;  %p1180_p13 = scmp.lt.u32.totalorder %s1171_s6, %s1548_s13 }
  0x79   : > { %p1179_p12 = por %p1178_p9, %p1177_p5 }
  0x7a   : > { %p1175_p4 = pneg %p1174_p11 }
  0x7b   : > { %p1181_p7 = por %p1180_p13, %p1179_p12 }
  0x7d   : > { %p1182_p2 = pnand %p1181_p7, %p1175_p4 }
  0x7f   : > { %1185 = shalt.err (!%p1182_p2)
}
  0x80   : > { %s1186_s28 = scalar_lea.vmem %s1540_s30, 1024  ;;  %s1301_s18 = smov [#allocation7]  }
  0x81   : > { %p1187_p6 = scmp.ne.s32.totalorder %s1540_s30, %s1186_s28  ;;  %s1191_s27 = sshll.u32 %s1301_s18, 4  ;;  %s1192_s27 = int_to_ptr.vmem [resolvable:$false] %s1191_s27 }
  0x82   : > { %s1193_s7 = scalar_lea.vmem %s1192_s27, 2048  ;;  %p1194_p8 = scmp.lt.s32.totalorder %s1540_s30, %s1192_s27 }
  0x83   : > { %p1189_p10 = pnand %p1187_p6, %p1143_p3  ;;  %p1195_p11 = scmp.lt.s32.totalorder %s1193_s7, %s1186_s28 }
  0x85   : > { %p1190_p1 = pneg %p1189_p10  ;;  %p1196_p5 = por %p1195_p11, %p1194_p8 }
  0x87   : > { %p1197_p9 = pnand %p1196_p5, %p1190_p1 }
  0x89   : > { %1200 = shalt.err (!%p1197_p9)
}
  0x8a   : > { %s1679_s12 = smov 4   ;;  %s1680_s6 = smov 64  }
  0x8b   : > { %967 = dma.hbm_to_vmem [thread:$0]  (!%p1503_p0), %s1548_s13, 1024, %s1540_s30, %s1550_s29, %s1680_s6, %s1680_s6, %s1679_s12  }
  0x8c   : > { %p1681_p3 = scmp.ne.s32.totalorder %s1675_s26, 0 }
  0x8d   : > { %s288_s10 = sand.u32 (!%p1681_p3), 1, %s1277_s19   ;;  %p1682_p4 = scmp.ne.s32.totalorder (!%p1681_p3), %s1674_s25, 0 }
  0x8e   : > { %286 = sbr.rel (%p1681_p3) target bundleno = 724 (0x2d4), region = 40  ;;  %s851_s15 = sshll.u32 (!%p1681_p3), %s288_s10, 3 }
  0x8f   : > { %s289_s14 = scalar_lea.sflag (!%p1681_p3), [#allocation5], %s288_s10  ;;  %s1582_s8 = scalar_lea.vmem (!%p1681_p3), [#allocation4], %s851_s15 }
  0x95   : > { %1252 = dma.done.wait (%p1682_p4), %s289_s14, 128  }
  0x96   : > { %1254 = vsyncadd (%p1682_p4), %s289_s14, 4294967168  ;;  %s297_s16 = sand.u32 1, %s1366_s24   ;;  %s852_s9 = sshll.u32 %s288_s10, 6 }
  0x97   : > { %s298_s30 = scalar_lea.sflag [#allocation8], %s297_s16  ;;  %s1589_s13 = scalar_lea.vmem [#allocation7], %s852_s9 }
  0x98   : > { %1256 = dma.done.wait (%p1682_p4), %s298_s30, 1024  }
  0x99   : > { %1258 = vsyncadd (%p1682_p4), %s298_s30, 4294966272  ;;  %p1683_p0 = scmp.eq.s32.totalorder %s1366_s24, 0 }
  0x9b   : > { %1260 = dma.done.wait (%p1683_p0), [#allocation8], 256   ;;  %p1684_p12 = pmov %p1683_p0 }
  0x9c   : > { %p1685_p13 = pmov %p1683_p0 }
  0x9d   : > { %1262 = vsyncadd (%p1684_p12), [#allocation8], 4294967040 }
  0x9e   : > { %1264 = dma.done.wait (%p1685_p13), [#allocation11], 256   ;;  %p1686_p7 = pmov %p1683_p0 }
  0x9f   : > { %p856_p2 = scmp.ne.s32.totalorder %s1285_s21, 0 }
  0xa0   : > { %1266 = vsyncadd (%p1686_p7), [#allocation11], 4294967040  ;;  %vm348_vm0 = vcmask (!%p856_p2), 130048   ;;  %vm353_vm1 = vcmask (!%p856_p2), 7168   ;;  %v1302_v0 = vmov (!%p856_p2), 0.0  }
  0xa1   : > { %347 = sbr.rel (%p856_p2) target bundleno = 168 (0xa8), region = 64  ;;  %349 = vst.msk [vmem:[#allocation2] sm:$0xff] (!%p856_p2), %vm348_vm0, %v1302_v0  ;;  %350 = vst.msk [vmem:[#allocation2 + $0x8] sm:$0xff] (!%p856_p2), %vm348_vm0, %v1302_v0 }
  0xa2   : > { %351 = vst.msk [vmem:[#allocation2 + $0x10] sm:$0xff] (!%p856_p2), %vm348_vm0, %v1302_v0  ;;  %352 = vst.msk [vmem:[#allocation2 + $0x18] sm:$0xff] (!%p856_p2), %vm348_vm0, %v1302_v0 }
  0xa3   : > { %354 = vst.msk [vmem:[#allocation3] sm:$0xff] (!%p856_p2), %vm353_vm1, %v1302_v0  ;;  %355 = vst.msk [vmem:[#allocation3 + $0x8] sm:$0xff] (!%p856_p2), %vm353_vm1, %v1302_v0 }
  0xa4   : > { %356 = vst.msk [vmem:[#allocation3 + $0x10] sm:$0xff] (!%p856_p2), %vm353_vm1, %v1302_v0  ;;  %357 = vst.msk [vmem:[#allocation3 + $0x18] sm:$0xff] (!%p856_p2), %vm353_vm1, %v1302_v0 }
  0xa8 PF: > { %v1035_v1 = vld [vmem:[%s1589_s13] sm:$0xff]   ;;  %v1036_v2 = vld [vmem:[%s1589_s13 + $0x8] sm:$0xff]   ;;  %v1037_v3 = vld [vmem:[%s1589_s13 + $0x10] sm:$0xff]   ;;  %vm512_vm2 = vcmask 7168   ;;  %vm482_vm3 = vcmask 130048   ;;  %p865_p6 = scmp.ne.s32.totalorder %s1285_s21, 1 }
  0xa9   : > { %895 = vmatprep.subr.bf16.mxu0 %v1035_v1  ;;  %v1038_v4 = vld [vmem:[%s1589_s13 + $0x18] sm:$0xff]   ;;  %v1039_v13 = vld [vmem:[%s1589_s13 + $0x20] sm:$0xff]   ;;  %v1040_v16 = vld [vmem:[%s1589_s13 + $0x28] sm:$0xff]   ;;  %v1303_v47 = vmov (!%p865_p6), 0  }
  0xaa   : > { %896 = vmatpush3.bf16.msra.mxu0 %v1035_v1  ;;  %v358_v5 = vld [vmem:[%s1582_s8] sm:$0xff]  ;;  %v363_v32 = vld [vmem:[#allocation2 + $0x10] sm:$0xff]  ;;  %v364_v35 = vld [vmem:[#allocation2 + $0x18] sm:$0xff]  ;;  %1044 = vset.pattern.permute.xlu1 (!%p865_p6), %v1303_v47 }
  0xab   : > { %897 = vmatprep.subr.bf16.mxu0 %v1036_v2  ;;  %v359_v6 = vunpack.c.l.s8.bf16 %v358_v5  ;;  %v494_v7 = vunpack.c.2.s8 %v358_v5  ;;  %v492_v8 = vunpack.c.0.s8 %v358_v5  ;;  %v495_v9 = vunpack.c.3.s8 %v358_v5  ;;  %v1041_v17 = vld [vmem:[%s1589_s13 + $0x30] sm:$0xff]   ;;  %v1042_v18 = vld [vmem:[%s1589_s13 + $0x38] sm:$0xff]   ;;  %v489_v20 = vld [vmem:[#allocation3 + $0x10] sm:$0xff]  ;;  %1043 = vset.pattern.permute.xlu0 (!%p865_p6), %v1303_v47 }
  0xac   : > { %v493_v10 = vunpack.c.1.s8 %v358_v5  ;;  %v360_v19 = vunpack.c.h.s8.bf16 %v358_v5  ;;  %v487_v21 = vld [vmem:[#allocation3] sm:$0xff]  ;;  %v490_v26 = vld [vmem:[#allocation3 + $0x18] sm:$0xff]  ;;  %v488_v27 = vld [vmem:[#allocation3 + $0x8] sm:$0xff] }
  0xad   : > { %911 = vmatprep.mubr.bf16.mxu0 %v359_v6  ;;  %v498_v11 = vcvt.s32.f32 %v494_v7  ;;  %v496_v12 = vcvt.s32.f32 %v492_v8  ;;  %v499_v14 = vcvt.s32.f32 %v495_v9  ;;  %v361_v33 = vld [vmem:[#allocation2] sm:$0xff]  ;;  %v362_v38 = vld [vmem:[#allocation2 + $0x8] sm:$0xff]  ;;  %v1047_v59 = vld [vmem:[#allocation9] sm:$0xff] (!%p865_p6)  }
  0xae   : > { %898 = vmatpush3.bf16.msra.mxu0 %v1036_v2  ;;  %v497_v15 = vcvt.s32.f32 %v493_v10  ;;  %v1045_v56 = vld [vmem:[#allocation10] sm:$0xff] (!%p865_p6)   ;;  %v1046_v58 = vld [vmem:[#allocation12] sm:$0xff] (!%p865_p6)   ;;  %v1048_v60 = vld [vmem:[#allocation9 + $0x8] sm:$0xff] (!%p865_p6)  }
  0xaf   : > { %899 = vmatprep.subr.bf16.mxu0 %v1037_v3  ;;  %504 = vadd.xlane.f32.xlu1 %v498_v11 }
  0xb0   : > { %500 = vadd.xlane.f32.xlu0 %v496_v12  ;;  %915 = vmatprep.subr.bf16.mxu1 (!%p865_p6), %v1046_v58 }
  0xb1   : > { %916 = vmatpush3.bf16.msra.mxu1 (!%p865_p6), %v1046_v58 }
  0xb2   : > { %900 = vmatpush3.bf16.msra.mxu0 %v1037_v3 }
  0xb3   : > { %901 = vmatprep.subr.bf16.mxu0 %v1038_v4  ;;  %506 = vadd.xlane.f32.xlu1 %v499_v14 }
  0xb4   : > { %502 = vadd.xlane.f32.xlu0 %v497_v15 }
  0xb6   : > { %902 = vmatpush3.bf16.msra.mxu0 %v1038_v4 }
  0xb7   : > { %903 = vmatprep.subr.bf16.mxu0 %v1039_v13 }
  0xba   : > { %904 = vmatpush3.bf16.msra.mxu0 %v1039_v13 }
  0xbb   : > { %905 = vmatprep.subr.bf16.mxu0 %v1040_v16 }
  0xbe   : > { %906 = vmatpush3.bf16.msra.mxu0 %v1040_v16 }
  0xbf   : > { %907 = vmatprep.subr.bf16.mxu0 %v1041_v17 }
  0xc2   : > { %908 = vmatpush3.bf16.msra.mxu0 %v1041_v17 }
  0xc3   : > { %909 = vmatprep.subr.bf16.mxu0 %v1042_v18 }
  0xc6   : > { %910 = vmatpush3.bf16.msra.mxu0 %v1042_v18 }
  0xc7   : > { %921 = vmatprep.subr.bf16.mxu0 (!%p865_p6), %v1045_v56 }
  0xc9   : > { %912 = vmatmul.mubr.bf16.vlgmr.msra.gmra.mrb[0].mxu0 %v360_v19 }
  0xca   : > { %922 = vmatpush3.bf16.msra.mxu0 (!%p865_p6), %v1045_v56  ;;  %923 = vmatprep.mubr.msk.bf16.mxu0 (!%p865_p6), %vm482_vm3, %v1047_v59 }
 0x13c   : > { %v505_v22 = vpop.xlane.xlu1 %504 }
 0x13d   : > { %v501_v23 = vpop.xlane.xlu0 %500  ;;  %v510_v24 = vadd.f32 %v505_v22, %v489_v20 }
 0x13e   : > { %v508_v25 = vadd.f32 %v501_v23, %v487_v21 }
 0x13f   : > { %515 = vst.msk [vmem:[#allocation3 + $0x10] sm:$0xff] %vm512_vm2, %v510_v24 }
 0x140   : > { %513 = vst.msk [vmem:[#allocation3] sm:$0xff] %vm512_vm2, %v508_v25  ;;  %v507_v28 = vpop.xlane.xlu1 %506 }
 0x141   : > { %v503_v29 = vpop.xlane.xlu0 %502  ;;  %v511_v30 = vadd.f32 %v507_v28, %v490_v26 }
 0x142   : > { %v509_v31 = vadd.f32 %v503_v29, %v488_v27 }
 0x143   : > { %516 = vst.msk [vmem:[#allocation3 + $0x18] sm:$0xff] %vm512_vm2, %v511_v30 }
 0x144   : > { %514 = vst.msk [vmem:[#allocation3 + $0x8] sm:$0xff] %vm512_vm2, %v509_v31 }
 0x146   : > { %v523_v44 = vld [vmem:[#allocation3 + $0x10] sm:$0xff] (!%p865_p6) }
 0x147   : > { %v521_v45 = vld [vmem:[#allocation3] sm:$0xff] (!%p865_p6)  ;;  %v527_v48 = vmax.f32 (!%p865_p6), %v523_v44, 1.0 }
 0x148   : > { %v525_v49 = vmax.f32 (!%p865_p6), %v521_v45, 1.0 }
 0x149   : > { %1049 = vrcp.f32 (!%p865_p6), %v527_v48 }
 0x14a   : > { %v524_v46 = vld [vmem:[#allocation3 + $0x18] sm:$0xff] (!%p865_p6)  ;;  %1051 = vrcp.f32 (!%p865_p6), %v525_v49 }
 0x14b   : > { %v528_v50 = vmax.f32 (!%p865_p6), %v524_v46, 1.0  ;;  %v522_v51 = vld [vmem:[#allocation3 + $0x8] sm:$0xff] (!%p865_p6) }
 0x14c   : > { %v526_v52 = vmax.f32 (!%p865_p6), %v522_v51, 1.0 }
 0x14d   : > { %1053 = vrcp.f32 (!%p865_p6), %v528_v50 }
 0x14e   : > { %1055 = vrcp.f32 (!%p865_p6), %v526_v52 }
 0x153   : > { %v1050_v53 = vpop.eup (!%p865_p6), %1049 }
 0x154   : > { %v1052_v54 = vpop.eup (!%p865_p6), %1051  ;;  %549 = vperm.xlu1 (!%p865_p6), %1044, %v1050_v53  }
 0x155   : > { %539 = vperm.xlu0 (!%p865_p6), %1043, %v1052_v54  }
 0x157   : > { %v1054_v55 = vpop.eup (!%p865_p6), %1053 }
 0x158   : > { %v1056_v57 = vpop.eup (!%p865_p6), %1055  ;;  %554 = vperm.xlu1 (!%p865_p6), %1044, %v1054_v55  }
 0x159   : > { %544 = vperm.xlu0 (!%p865_p6), %1043, %v1056_v57  }
 0x19c   : > { %v913_v34 = vpop.f32.mrb[0].mxu0  ;;  %520 = sbr.rel (%p865_p6) target bundleno = 698 (0x2ba), region = 68 }
 0x19d   : > { %v480_v36 = vadd.f32 %v913_v34, %v363_v32  ;;  %v463_v37 = vpop.f32.mrb[1].mxu0 }
 0x19e   : > { %v478_v39 = vadd.f32 %v463_v37, %v361_v33  ;;  %v914_v40 = vpop.f32.mrb[2].mxu0 }
 0x19f   : > { %485 = vst.msk [vmem:[#allocation2 + $0x10] sm:$0xff] %vm482_vm3, %v480_v36  ;;  %v481_v41 = vadd.f32 %v914_v40, %v364_v35  ;;  %v466_v42 = vpop.f32.mrb[3].mxu0  ;;  %924 = vmatmul.mubr.msk.bf16.vlgmr.msra.gmra.mrb[0].mxu0 (!%p865_p6), %vm482_vm3, %v1048_v60 }
 0x1a0   : > { %483 = vst.msk [vmem:[#allocation2] sm:$0xff] %vm482_vm3, %v478_v39  ;;  %v479_v43 = vadd.f32 %v466_v42, %v362_v38 }
 0x1a1   : > { %486 = vst.msk [vmem:[#allocation2 + $0x18] sm:$0xff] %vm482_vm3, %v481_v41 }
 0x1a2   : > { %484 = vst.msk [vmem:[#allocation2 + $0x8] sm:$0xff] %vm482_vm3, %v479_v43 }
 0x1a6   : > { %v535_v63 = vld [vmem:[#allocation2 + $0x10] sm:$0xff] }
 0x1a7   : > { %v533_v1 = vld [vmem:[#allocation2] sm:$0xff] }
 0x1a8   : > { %v536_v0 = vld [vmem:[#allocation2 + $0x18] sm:$0xff] }
 0x1a9   : > { %v534_v2 = vld [vmem:[#allocation2 + $0x8] sm:$0xff] }
 0x1d3   : > { %v550_v61 = vpop.permute.xlu1 %549 }
 0x1d4   : > { %v540_v62 = vpop.permute.xlu0 %539  ;;  %v559_v4 = vmul.f32 %v550_v61, %v535_v63 }
 0x1d5   : > { %v557_v7 = vmul.f32 %v540_v62, %v533_v1 }
 0x1d7   : > { %v555_v3 = vpop.permute.xlu1 %554 }
 0x1d8   : > { %v560_v5 = vmul.f32 %v555_v3, %v536_v0  ;;  %v545_v6 = vpop.permute.xlu0 %544 }
 0x1d9   : > { %v558_v8 = vmul.f32 %v545_v6, %v534_v2 }
 0x1da   : > { %v562_v9 = vpack.c.bf16 %v560_v5, %v559_v4 }
 0x1db   : > { %v561_v10 = vpack.c.bf16 %v558_v8, %v557_v7 }
 0x1dd   : > { %917 = vmatprep.mubr.msk.bf16.mxu1 %vm482_vm3, %v561_v10 }
 0x1de   : > { %918 = vmatmul.mubr.msk.bf16.vlgmr.msra.gmra.mrb[0].mxu1 %vm482_vm3, %v562_v9 }
 0x272   : > { %v925_v11 = vpop.f32.mrb[0].mxu0 }
 0x273   : > { %v688_v12 = vpop.f32.mrb[1].mxu0 }
 0x274   : > { %v926_v13 = vpop.f32.mrb[2].mxu0 }
 0x275   : > { %v691_v14 = vpop.f32.mrb[3].mxu0 }
 0x2b1   : > { %v919_v15 = vpop.f32.mrb[0].mxu1 }
 0x2b2   : > { %v697_v16 = vadd.f32 %v925_v11, %v919_v15  ;;  %v617_v17 = vpop.f32.mrb[1].mxu1 }
 0x2b3   : > { %v689_v18 = vadd.f32 %v688_v12, %v617_v17  ;;  %v920_v19 = vpop.f32.mrb[2].mxu1 }
 0x2b4   : > { %v705_v20 = vmax.f32 %v697_v16, 0.0  ;;  %v700_v21 = vadd.f32 %v926_v13, %v920_v19  ;;  %v620_v22 = vpop.f32.mrb[3].mxu1 }
 0x2b5   : > { %v703_v23 = vmax.f32 %v689_v18, 0.0  ;;  %v692_v24 = vadd.f32 %v691_v14, %v620_v22 }
 0x2b6   : > { %709 = vst [vmem:[#allocation13 + $0x10] sm:$0xff] %v705_v20  ;;  %v706_v25 = vmax.f32 %v700_v21, 0.0 }
 0x2b7   : > { %707 = vst [vmem:[#allocation13] sm:$0xff] %v703_v23  ;;  %v704_v26 = vmax.f32 %v692_v24, 0.0 }
 0x2b8   : > { %710 = vst [vmem:[#allocation13 + $0x18] sm:$0xff] %v706_v25 }
 0x2b9   : > { %708 = vst [vmem:[#allocation13 + $0x8] sm:$0xff] %v704_v26 }
 0x2ba PF: > { %p975_p10 = scmp.eq.s32.totalorder %s1366_s24, 1  ;;  %s1304_s21 = smov [#allocation13]  }
 0x2bb   : > { %s720_s25 = sshll.u32 %s1304_s21, 4  ;;  %s721_s25 = int_to_ptr.vmem [resolvable:$true] %s720_s25 }
 0x2bc   : > { %s1201_s26 = scalar_lea.vmem %s721_s25, 512  ;;  %p1208_p5 = scmp.lt.s32.totalorder %s721_s25, %s721_s25 }
 0x2bd   : > { %p1202_p1 = scmp.ne.s32.totalorder %s721_s25, %s1201_s26  ;;  %p1209_p9 = scmp.lt.s32.totalorder %s1201_s26, %s1201_s26 }
 0x2bf   : > { %p1203_p8 = pnand %p1202_p1, %p975_p10  ;;  %p1210_p3 = por %p1209_p9, %p1208_p5 }
 0x2c1   : > { %p1204_p11 = pneg %p1203_p8 }
 0x2c3   : > { %p1211_p4 = pnand %p1210_p3, %p1204_p11 }
 0x2c5   : > { %1214 = shalt.err (!%p1211_p4)
}
 0x2c6   : > { %s1215_s18 = scalar_lea.hbm %s1668_s5, 512 }
 0x2c7   : > { %p1216_p0 = scmp.ne.s32.totalorder %s1668_s5, %s1215_s18  ;;  %p1221_p7 = scmp.lt.u32.totalorder %s1215_s18, %s1668_s5 }
 0x2c9   : > { %p1217_p12 = pnand %p1216_p0, %p975_p10 }
 0x2cb   : > { %p1218_p13 = pneg %p1217_p12 }
 0x2cd   : > { %p1223_p2 = pnand %p1221_p7, %p1218_p13 }
 0x2cf   : > { %1226 = shalt.err (!%p1223_p2)
}
 0x2d0   : > { %s1305_s10 = smov 128   ;;  %s1306_s15 = smov 8  }
 0x2d1   : > { %948 = dma.vmem_to_hbm [thread:$0]  (%p975_p10), %s721_s25, 512, %s1668_s5, [#allocation6], %s1305_s10, %s1305_s10, %s1306_s15  }
 0x2d2   : > { %1268 = dma.done.wait (%p975_p10), [#allocation6], 512  }
 0x2d3   : > { %1270 = vsyncadd (%p975_p10), [#allocation6], 4294966784 }
 0x2d4 PF: > { %s23_s23 = sadd.s32 1, %s1293_s23   ;;  %s1687_s18 = smov %s1277_s19 }
 0x2d5   : > { %p20_p6 = scmp.ge.s32.totalorder %s23_s23, 4   ;;  %s1688_s19 = smov %s1281_s20 }
 0x2d6   : > { %s1689_s20 = smov %s1492_s11  ;;  %s1690_s21 = smov %s1289_s22 }
 0x2d7   : > { %s1691_s22 = smov %s1693_s17  ;;  %22 = sbr.rel (!%p20_p6) target bundleno = 8 (0x8), region = 112 }
 0x2de   :  { %736 = vsyncpa [#allocation5], 1 }
 0x2df   :  { %738 = vsyncpa [#allocation5 + $0x1], 1 }
 0x2e0   :  { %739 = vsyncpa [#allocation8], 1 }
 0x2e1   :  { %741 = vsyncpa [#allocation8 + $0x1], 1 }
 0x2e2   :  { %742 = vsyncpa [#allocation11], 1 }
 0x2e3   :  { %743 = vsyncpa [#allocation6], 1 }
 0x2e4   :  { %745 = vsyncpa [#allocation6 + $0x1], 1 }

</bundles_post_ra>
